<compile_context>
chip_gen: v6e
topology: v6e:2x2x1
jax: 0.10.0
libtpu: 0.0.40
codegen_flags: <defaults>
</compile_context>

<pallas_src>
import jax
import jax.numpy as jnp
from jax import lax
from jax.experimental import pallas as pl
from jax.experimental.pallas import tpu as pltpu


def sinusoidal_embedding(n_channels, dim, dtype=jnp.float32):
    """JAX port of the PyTorch sinusoidal_embedding. Returns (n_channels, dim)."""
    pos = jnp.arange(n_channels, dtype=jnp.float32)[:, None]               # (n, 1)
    i = jnp.arange(dim)[None, :]                                           # (1, d)
    angle = pos / jnp.power(10000.0, (2.0 * (i // 2).astype(jnp.float32)) / dim)
    pe = jnp.where(i % 2 == 0, jnp.sin(angle), jnp.cos(angle))             # even: sin, odd: cos
    return pe.astype(dtype)                                                # (n, d)


def _embed_kernel(x_ref, xprev_ref, ct_ref, pe_ref, o_ref):
    # x_ref:     (1, tile_t, D)  current x tile (block index clamped for the tail tile)
    # xprev_ref: (1, 8, D)       8-row x block whose LAST row is x[j*tile_t - 1]
    # ct_ref:    (1, D)          class token
    # pe_ref:    (tile_t, D)     zero-prepended positional table rows [j*tile_t, ...)
    # o_ref:     (1, tile_t, D)  output rows [j*tile_t, ...) of the (T+1)-row result
    j = pl.program_id(0)
    curr = x_ref[0]                                       # (tile_t, D)
    shifted = pltpu.roll(curr, shift=1, axis=0)           # row i -> x[.. i-1]; row 0 is wrap junk
    prev_row = xprev_ref[0][7:8, :]                       # (1, D) == x[j*tile_t - 1] for j >= 1
    first_row = jnp.where(j == 0, ct_ref[...], prev_row)  # class token only in the first tile
    row = lax.broadcasted_iota(jnp.int32, shifted.shape, 0)
    body = jnp.where(row == 0, first_row, shifted)        # fix up local row 0
    o_ref[0] = body + pe_ref[...]                         # pe_shifted[0] == 0 -> class token intact


def _choose_tile_t(T, B, max_tile_t):
    """Sequence tile in rows: multiple of 8, <= T when possible, split for B == 1."""
    if T < 8:
        return 8  # single padded block (tiny-sequence fallback)
    tile = min(max_tile_t, (T // 8) * 8)
    if B == 1 and T >= 16:
        # v7x megacore: give both TensorCores roughly half the sequence.
        half = (T + 2) // 2                               # cdiv(T+1, 2)
        tile = max(8, min(tile, ((half + 7) // 8) * 8))
    return tile


def conformer_embed(x, pe_shifted, class_token, *, max_tile_t=4096):
    """out[b] = vstack([class_token, x[b] + pe[:T]]).  x: (B,T,D); pe_shifted: (max_len+1,D)."""
    B, T, D = x.shape
    assert T + 1 <= pe_shifted.shape[0], "sequence length exceeds positional table"

    tile_t = _choose_tile_t(T, B, max_tile_t)
    n_out = pl.cdiv(T + 1, tile_t)          # output tiles along the (T+1)-row axis
    n_x = max(pl.cdiv(T, tile_t), 1)        # valid x tiles
    tile_t8 = tile_t // 8                   # xprev granularity (tile_t is a multiple of 8)

    grid = (n_out, B)                       # batch innermost -> pe / ct fetched once per T-tile

    def x_map(j, b):
        return (b, jnp.minimum(j, n_x - 1), 0)            # clamp for the class-token tail tile

    def xprev_map(j, b):
        return (b, jnp.maximum(j * tile_t8 - 1, 0), 0)    # 8-row block ending at x[j*tile_t - 1]

    return pl.pallas_call(
        _embed_kernel,
        out_shape=jax.ShapeDtypeStruct((B, T + 1, D), x.dtype),
        grid_spec=pltpu.PrefetchScalarGridSpec(
            num_scalar_prefetch=0,
            grid=grid,
            in_specs=[
                pl.BlockSpec((1, tile_t, D), x_map),
                pl.BlockSpec((1, 8, D), xprev_map),
                pl.BlockSpec((1, D), lambda j, b: (0, 0)),
                pl.BlockSpec((tile_t, D), lambda j, b: (j, 0)),
            ],
            out_specs=pl.BlockSpec((1, tile_t, D), lambda j, b: (b, j, 0)),
        ),
        compiler_params=pltpu.CompilerParams(
            dimension_semantics=("parallel", "parallel"),
            vmem_limit_bytes=48 << 20,
        ),
    )(x, x, class_token, pe_shifted)


class MyConformerPallas:
    """Pallas/JAX equivalent of MyConformer's own forward logic (embedding prologue)."""

    def __init__(self, emb_size=128, max_len=10000, key=jax.random.PRNGKey(0)):
        self.emb_size = emb_size
        self.max_len = max_len
        self.positional_emb = sinusoidal_embedding(max_len, emb_size)       # (max_len, D)
        # Pre-shifted (built once): row 0 = 0 (class-token slot), row 1+t = pe[t].
        self.pe_shifted = jnp.concatenate(
            [jnp.zeros((1, emb_size), self.positional_emb.dtype), self.positional_emb], axis=0)
        self.class_token = jax.random.uniform(key, (1, emb_size), jnp.float32)

    def __call__(self, x):
        B, T, D = x.shape
        if T > self.max_len:
            raise ValueError(f"T={T} exceeds positional table max_len={self.max_len}")
        out = conformer_embed(
            x, self.pe_shifted.astype(x.dtype), self.class_token.astype(x.dtype))
        # TODO(synk): IELTEncoder is not defined in the provided source; the encoder
        # stage (x, xc = self.encoder(...)) cannot be translated and is omitted.
        return out


if __name__ == "__main__":
    D = 128
    model = MyConformerPallas(emb_size=D, max_len=10000, key=jax.random.PRNGKey(0))

    def reference(x):
        B, T, _ = x.shape
        body = x + model.positional_emb[None, :T, :]
        ct = jnp.broadcast_to(model.class_token[None, :, :], (B, 1, D)).astype(x.dtype)
        return jnp.concatenate([ct, body], axis=1)

    # case 1: B=2, T=8 — exercises the extra class-token tail tile + clamped x block
    x1 = jax.random.normal(jax.random.PRNGKey(0), (2, 8, D), jnp.float32)
    out1 = jax.block_until_ready(model(x1))
    assert out1.shape == (2, 9, D)
    assert jnp.allclose(out1, reference(x1), atol=1e-5)

    # case 2: B=1, T=24 — exercises multi-tile sequence + B==1 tile halving (megacore)
    x2 = jax.random.normal(jax.random.PRNGKey(2), (1, 24, D), jnp.float32)
    out2 = jax.block_until_ready(model(x2))
    assert out2.shape == (1, 25, D)
    assert jnp.allclose(out2, reference(x2), atol=1e-5)

    print("KERNEL_OK")
</pallas_src>

<mosaic_0001>
module attributes {stable_mosaic.version = 11 : i64} {
  func.func @_embed_kernel(%arg0: i32, %arg1: i32, %arg2: memref<1x8x128xf32, #tpu.memory_space<vmem>>, %arg3: memref<1x8x128xf32, #tpu.memory_space<vmem>>, %arg4: memref<1x128xf32, #tpu.memory_space<vmem>>, %arg5: memref<8x128xf32, #tpu.memory_space<vmem>>, %arg6: memref<1x8x128xf32, #tpu.memory_space<vmem>>) attributes {dimension_semantics = [#tpu.dimension_semantics<parallel>, #tpu.dimension_semantics<parallel>], iteration_bounds = array<i64: 2, 2>, scalar_prefetch = 0 : i64, scratch_operands = 0 : i64, tpu.core_type = #tpu.core_type<tc>, window_params = [{transform_indices = @transform_0, window_bounds = array<i64: 1, 8, 128>}, {transform_indices = @transform_1, window_bounds = array<i64: 1, 8, 128>}, {pipeline_mode = #tpu.pipeline_mode<synchronous>, transform_indices = @transform_2, window_bounds = array<i64: 1, 128>}, {transform_indices = @transform_3, window_bounds = array<i64: 8, 128>}, {transform_indices = @transform_4, window_bounds = array<i64: 1, 8, 128>}]} {
    %c0 = arith.constant 0 : index
    %c0_0 = arith.constant 0 : index
    %c0_1 = arith.constant 0 : index
    %0 = vector.load %arg2[%c0, %c0_0, %c0_1] : memref<1x8x128xf32, #tpu.memory_space<vmem>>, vector<1x8x128xf32>
    %1 = vector.shape_cast %0 : vector<1x8x128xf32> to vector<8x128xf32>
    %c1_i32 = arith.constant 1 : i32
    %2 = tpu.dynamic_rotate %1 by %c1_i32 dim 0 : vector<8x128xf32>, i32 -> vector<8x128xf32>
    %c0_2 = arith.constant 0 : index
    %c0_3 = arith.constant 0 : index
    %c0_4 = arith.constant 0 : index
    %3 = vector.load %arg3[%c0_2, %c0_3, %c0_4] : memref<1x8x128xf32, #tpu.memory_space<vmem>>, vector<1x8x128xf32>
    %4 = vector.shape_cast %3 : vector<1x8x128xf32> to vector<8x128xf32>
    %5 = vector.extract_strided_slice %4 {offsets = [7, 0], sizes = [1, 128], strides = [1, 1]} : vector<8x128xf32> to vector<1x128xf32>
    %c0_i32 = arith.constant 0 : i32
    %6 = arith.cmpi eq, %arg0, %c0_i32 : i32
    %c0_5 = arith.constant 0 : index
    %c0_6 = arith.constant 0 : index
    %7 = vector.load %arg4[%c0_5, %c0_6] : memref<1x128xf32, #tpu.memory_space<vmem>>, vector<1x128xf32>
    %8 = arith.select %6, %7, %5 : vector<1x128xf32>
    %9 = tpu.iota {dimensions = array<i32: 0>} : vector<8x128xi32>
    %c0_i32_7 = arith.constant 0 : i32
    %10 = vector.broadcast %c0_i32_7 : i32 to vector<8x128xi32>
    %11 = arith.cmpi eq, %9, %10 : vector<8x128xi32>
    %12 = vector.shape_cast %8 : vector<1x128xf32> to vector<1x128xf32>
    %13 = vector.broadcast %12 : vector<1x128xf32> to vector<8x128xf32>
    %14 = arith.select %11, %13, %2 : vector<8x128xi1>, vector<8x128xf32>
    %c0_8 = arith.constant 0 : index
    %c0_9 = arith.constant 0 : index
    %15 = vector.load %arg5[%c0_8, %c0_9] : memref<8x128xf32, #tpu.memory_space<vmem>>, vector<8x128xf32>
    %16 = arith.addf %14, %15 : vector<8x128xf32>
    %c0_10 = arith.constant 0 : index
    %c0_11 = arith.constant 0 : index
    %c0_12 = arith.constant 0 : index
    %17 = vector.load %arg6[%c0_10, %c0_11, %c0_12] : memref<1x8x128xf32, #tpu.memory_space<vmem>>, vector<1x8x128xf32>
    %18 = vector.shape_cast %17 : vector<1x8x128xf32> to vector<8x128xf32>
    %19 = vector.shape_cast %16 : vector<8x128xf32> to vector<1x8x128xf32>
    tpu.vector_store %arg6[%c0_10, %c0_11, %c0_12], %19 {strides = array<i32>} : memref<1x8x128xf32, #tpu.memory_space<vmem>>, vector<1x8x128xf32>,
    return
  }
  func.func @transform_0(%arg0: i32, %arg1: i32) -> (i32, i32, i32) {
    %c0_i32 = arith.constant 0 : i32
    %0 = arith.minsi %arg0, %c0_i32 : i32
    %c0_i32_0 = arith.constant 0 : i32
    %c0_i32_1 = arith.constant 0 : i32
    return %arg1, %0, %c0_i32_0 : i32, i32, i32
  }
  func.func @transform_1(%arg0: i32, %arg1: i32) -> (i32, i32, i32) {
    %c1_i32 = arith.constant 1 : i32
    %0 = arith.muli %arg0, %c1_i32 : i32
    %c1_i32_0 = arith.constant 1 : i32
    %1 = arith.subi %0, %c1_i32_0 : i32
    %c0_i32 = arith.constant 0 : i32
    %2 = arith.maxsi %1, %c0_i32 : i32
    %c0_i32_1 = arith.constant 0 : i32
    %c0_i32_2 = arith.constant 0 : i32
    return %arg1, %2, %c0_i32_1 : i32, i32, i32
  }
  func.func @transform_2(%arg0: i32, %arg1: i32) -> (i32, i32) {
    %c0_i32 = arith.constant 0 : i32
    %c0_i32_0 = arith.constant 0 : i32
    %c0_i32_1 = arith.constant 0 : i32
    return %c0_i32, %c0_i32_0 : i32, i32
  }
  func.func @transform_3(%arg0: i32, %arg1: i32) -> (i32, i32) {
    %c0_i32 = arith.constant 0 : i32
    %c0_i32_0 = arith.constant 0 : i32
    return %arg0, %c0_i32 : i32, i32
  }
  func.func @transform_4(%arg0: i32, %arg1: i32) -> (i32, i32, i32) {
    %c0_i32 = arith.constant 0 : i32
    %c0_i32_0 = arith.constant 0 : i32
    return %arg1, %arg0, %c0_i32 : i32, i32, i32
  }
}

</mosaic_0001>

<bundles_post_ra>
// kernel: tpu_custom_call.1
= control target key start
LH: loop header
LB: loop body
LE: loop exit
PB: predicated region body
PF: predicated region fallthrough
CT: control target
= control target key end

     0   :  { %s1284_s0 = inlined_call_operand.hbm [shape: f32[2,8,128], index: 0, kind: input, shape index: {}]   ;;  %s1285_s1 = inlined_call_operand.hbm [shape: f32[2,8,128], index: 1, kind: input, shape index: {}]   ;;  %s1286_s2 = inlined_call_operand.hbm [shape: f32[1,128], index: 2, kind: input, shape index: {}]   ;;  %s1287_s3 = inlined_call_operand.hbm [shape: f32[10001,128], index: 3, kind: input, shape index: {}]   ;;  %s1288_s4 = inlined_call_operand.vmem [shape: f32[2,9,128], index: 4, kind: output, shape index: {}]  }
   0x1   :  { %1304 = sst [smem:[#allocation18_spill]] %s1284_s0 }
   0x2   :  { %1305 = sst [smem:[#allocation19_spill]] %s1286_s2 }
   0x3   :  { %1306 = sst [smem:[#allocation20_spill]] %s1288_s4 }
   0x4   :  { %9 = vsyncpa [#allocation3], 0 }
   0x5   :  { %11 = vsyncpa [#allocation3 + $0x1], 0 }
   0x6   :  { %12 = vsyncpa [#allocation5], 0 }
   0x7   :  { %14 = vsyncpa [#allocation5 + $0x1], 0 }
   0x8   :  { %15 = vsyncpa [#allocation8], 0 }
   0x9   :  { %17 = vsyncpa [#allocation8 + $0x1], 0  ;;  %s970_s15 = smov 0   ;;  %s972_s16 = smov 0  }
   0xa   :  { %s974_s17 = smov 0   ;;  %s976_s18 = smov 0  }
   0xb   :  { %s978_s19 = smov 0   ;;  %s980_s20 = smov 0  }
   0xc   :  { %s982_s21 = smov 0   ;;  %s984_s22 = smov 0  }
   0xd   :  { %s986_s23 = smov 0   ;;  %s988_s24 = smov 0  }
   0xe   :  { %s990_s25 = smov 0   ;;  %s992_s26 = smov 0  }
   0xf   :  { %s994_s27 = smov 0   ;;  %s996_s28 = smov 0  }
  0x10 LB: > { %1307 = sst [smem:[#allocation13_spill]] %s914_s22  ;;  %s1289_s29 = sadd.s32 4294967295, %s938_s28   ;;  %s938_s28 = sphi %s996_s28, %s23_s28   ;;  %s934_s27 = sphi %s994_s27, %s1355_s27   ;;  %s930_s26 = sphi %s992_s26, %s1354_s26   ;;  %s926_s25 = sphi %s990_s25, %s1353_s25   ;;  %s922_s24 = sphi %s988_s24, %s1352_s24   ;;  %s918_s23 = sphi %s986_s23, %s1351_s23   ;;  %s914_s22 = sphi %s984_s22, %s1350_s22   ;;  %s910_s21 = sphi %s982_s21, %s1349_s21   ;;  %s906_s20 = sphi %s980_s20, %s1348_s20   ;;  %s902_s19 = sphi %s978_s19, %s1347_s19   ;;  %s898_s18 = sphi %s976_s18, %s1346_s18   ;;  %s894_s17 = sphi %s974_s17, %s1345_s17   ;;  %s890_s16 = sphi %s972_s16, %s1344_s16   ;;  %s886_s15 = sphi %s970_s15, %s1343_s15  }
  0x11   : > { %1308 = sst [smem:[#allocation14_spill]] %s922_s24  ;;  %p541_p0 = scmp.ge.s32.totalorder %s938_s28, 1 }
  0x12   : > { %1309 = sst [smem:[#allocation15_spill]] %s926_s25  ;;  %p1044_p1 = scmp.eq.s32.totalorder %s1289_s29, 0 }
  0x13   : > { %p181_p2 = scmp.lt.s32.totalorder %s938_s28, 5  ;;  %s940_s6 = smov [#allocation6]  }
  0x14   : > { %s1310_s30 = scalar_select %p1044_p1, 1, 0 }
  0x15   : > { %p1049_p3 = pnand %p541_p0, %p181_p2  ;;  %s194_s7 = sshll.u32 %s940_s6, 4  ;;  %s195_s7 = int_to_ptr.vmem [resolvable:$true] %s194_s7 }
  0x16   : > { %s713_s8 = scalar_lea.vmem %s195_s7, 16  ;;  %s720_s9 = scalar_lea.vmem %s195_s7, 32 }
  0x17   : > { %s1311_s5 = scalar_select %p1049_p3, 1, 0 }
  0x18   : > { %p570_p4 = pneg %p1049_p3  ;;  %p714_p7 = scmp.ne.s32.totalorder %s195_s7, %s713_s8 }
  0x19   : > { %p721_p10 = scmp.lt.s32.totalorder %s195_s7, %s195_s7  ;;  %p722_p11 = scmp.lt.s32.totalorder %s720_s9, %s713_s8 }
  0x1a   : > { %p571_p5 = pnand %p570_p4, %p1044_p1 }
  0x1b   : > { %p723_p12 = por %p722_p11, %p721_p10 }
  0x1c   : > { %p704_p6 = pneg %p571_p5 }
  0x1e   : > { %p716_p8 = pnand %p714_p7, %p704_p6 }
  0x20   : > { %p717_p9 = pneg %p716_p8 }
  0x22   : > { %p724_p13 = pnand %p723_p12, %p717_p9 }
  0x24   : > { %727 = shalt.err (!%p724_p13)
}
  0x25   : > { %s1312_s2 = sld [smem:[#allocation19_spill]]  ;;  %s32_s12 = sadd.s32 1, %s930_s26 }
  0x26   : > { %p33_p0 = scmp.ge.s32.totalorder %s32_s12, 2  ;;  %s35_s13 = sadd.s32 1, %s934_s27 }
  0x27   : > { %s48_s14 = sadd.s32 1, %s918_s23  ;;  %p55_p4 = scmp.ne.s32.totalorder %s918_s23, %s914_s22 }
  0x28   : > { %s1357_s12 = smov (%p33_p0, %s32_s12), 0  ;;  %s1359_s13 = smov (!%p33_p0, %s35_s13), %s934_s27 }
  0x29   : > { %1313 = sst [smem:[#allocation16_spill]] %s1357_s12  ;;  %p37_p2 = scmp.ge.s32.totalorder %s1359_s13, 2 }
  0x2a   : > { %s43_s6 = ssub.s32 %s930_s26, %s1357_s12  ;;  %p1297_p6 = scmp.eq.s32.totalorder %s938_s28, 0 }
  0x2b   : > { %573 = dma.hbm_to_vmem [thread:$0]  (!%p571_p5), %s1312_s2, 16, %s195_s7, [#allocation5]  }
  0x2c   : > { %s1361_s13 = smov (%p37_p2, %s1359_s13), 0  ;;  %p1075_p5 = por %p1297_p6, %p55_p4 }
  0x2d   : > { %p61_p7 = scmp.ne.s32.totalorder %s914_s22, %s910_s21  ;;  %p1296_p8 = scmp.lt.s32.totalorder %s938_s28, 4 }
  0x2e   : > { %s205_s9 = sand.u32 1, %s918_s23   ;;  %p1089_p10 = scmp.eq.s32.totalorder %s43_s6, 0 }
  0x2f   : > { %p1084_p9 = por %p1044_p1, %p61_p7  ;;  %s544_s10 = sshll.u32 %s205_s9, 3 }
  0x30   : > { %s1317_s11 = scalar_select %p1089_p10, 1, 0 }
  0x31   : > { %s1315_s8 = scalar_select %p1084_p9, 1, 0 }
  0x32   : > { %s545_s29 = sshll.u32 %s930_s26, 7  ;;  %s1318_s0 = sld [smem:[#allocation18_spill]] }
  0x33   : > { %1316 = sst [smem:[#allocation17_spill]] %s1315_s8  ;;  %s209_s21 = scalar_lea.vmem [#allocation2], %s544_s10 }
  0x34   : > { %s219_s25 = sshll.u32 %s209_s21, 4  ;;  %p1110_p11 = pnand %p1296_p8, %p1075_p5  ;;  %s220_s25 = int_to_ptr.vmem [resolvable:$true] %s219_s25 }
  0x35   : > { %s1104_s24 = scalar_select %p1089_p10, %s918_s23, %s48_s14  }
  0x36   : > { %s206_s8 = scalar_lea.sflag [#allocation3], %s205_s9  ;;  %p730_p13 = pneg %p1110_p11 }
  0x38   : > { %s1099_s4 = scalar_lea.hbm %s1318_s0, %s545_s29  ;;  %s733_s14 = scalar_lea.hbm %s1318_s0, 256 }
  0x39   : > { %s728_s22 = scalar_lea.hbm %s1099_s4, 128 }
  0x3a   : > { %p729_p12 = scmp.ne.s32.totalorder %s1099_s4, %s728_s22  ;;  %p735_p4 = scmp.lt.s32.totalorder %s733_s14, %s728_s22 }
  0x3c   : > { %p731_p0 = pnand %p730_p13, %p729_p12 }
  0x3e   : > { %p732_p2 = pneg %p731_p0 }
  0x40   : > { %p737_p7 = pnand %p735_p4, %p732_p2 }
  0x42   : > { %740 = shalt.err (!%p737_p7)
}
  0x43   : > { %s741_s7 = scalar_lea.vmem %s220_s25, 128  ;;  %s941_s10 = smov [#allocation2]  }
  0x44   : > { %p742_p5 = scmp.ne.s32.totalorder %s220_s25, %s741_s7  ;;  %s746_s21 = sshll.u32 %s941_s10, 4  ;;  %s747_s21 = int_to_ptr.vmem [resolvable:$false] %s746_s21 }
  0x45   : > { %s748_s9 = scalar_lea.vmem %s747_s21, 256  ;;  %p749_p9 = scmp.lt.s32.totalorder %s220_s25, %s747_s21 }
  0x46   : > { %p744_p8 = pnand %p742_p5, %p730_p13  ;;  %p750_p3 = scmp.lt.s32.totalorder %s748_s9, %s741_s7 }
  0x48   : > { %p745_p6 = pneg %p744_p8  ;;  %p751_p10 = por %p750_p3, %p749_p9 }
  0x4a   : > { %p752_p12 = pnand %p751_p10, %p745_p6 }
  0x4c   : > { %755 = shalt.err (!%p752_p12)
}
  0x4d   : > { %577 = dma.hbm_to_vmem [thread:$0]  (!%p1110_p11), %s1099_s4, 128, %s220_s25, %s206_s8  }
  0x4e   : > { %s82_s22 = sadd.s32 1, %s906_s20  ;;  %p89_p3 = scmp.ne.s32.totalorder %s906_s20, %s902_s19 }
  0x4f   : > { %p95_p6 = scmp.ne.s32.totalorder %s902_s19, %s898_s18  ;;  %s226_s2 = sand.u32 1, %s938_s28  }
  0x50   : > { %p1320_p8 = scmp.eq.s32.totalorder %s938_s28, 0  ;;  %s228_s12 = sand.u32 1, %s906_s20  }
  0x51   : > { %p1134_p10 = por %p95_p6, %p1044_p1  ;;  %p1322_p13 = scmp.ne.s32.totalorder %s1317_s11, 0 }
  0x52   : > { %p91_p9 = por %p89_p3, %p1320_p8  ;;  %s546_s7 = sshll.u32 %s228_s12, 3 }
  0x53   : > { %s1321_s6 = scalar_select %p1134_p10, 1, 0 }
  0x54   : > { %s1142_s14 = scalar_select %p1322_p13, %s906_s20, %s82_s22  }
  0x55   : > { %s239_s4 = scalar_lea.hbm %s1285_s1, %s545_s29  ;;  %s230_s25 = scalar_lea.vmem [#allocation4], %s546_s7 }
  0x56   : > { %s241_s18 = sshll.u32 %s230_s25, 4  ;;  %p1323_p11 = scmp.lt.s32.totalorder %s938_s28, 4  ;;  %s242_s18 = int_to_ptr.vmem [resolvable:$true] %s241_s18 }
  0x57   : > { %s227_s9 = scalar_lea.sflag [#allocation5], %s226_s2  ;;  %s756_s0 = scalar_lea.hbm %s239_s4, 128 }
  0x58   : > { %p1151_p0 = pnand %p1323_p11, %p91_p9  ;;  %p757_p2 = scmp.ne.s32.totalorder %s239_s4, %s756_s0 }
  0x59   : > { %p762_p12 = scmp.lt.s32.totalorder %s239_s4, %s1285_s1 }
  0x5a   : > { %p758_p4 = pneg %p1151_p0 }
  0x5c   : > { %p759_p7 = pnand %p758_p4, %p757_p2 }
  0x5e   : > { %p760_p5 = pneg %p759_p7 }
  0x60   : > { %p765_p3 = pnand %p762_p12, %p760_p5 }
  0x62   : > { %768 = shalt.err (!%p765_p3)
}
  0x63   : > { %s769_s29 = scalar_lea.vmem %s242_s18, 128  ;;  %s942_s12 = smov [#allocation4]  }
  0x64   : > { %p770_p6 = scmp.ne.s32.totalorder %s242_s18, %s769_s29  ;;  %s774_s7 = sshll.u32 %s942_s12, 4  ;;  %s775_s7 = int_to_ptr.vmem [resolvable:$false] %s774_s7 }
  0x65   : > { %s776_s2 = scalar_lea.vmem %s775_s7, 256  ;;  %p777_p13 = scmp.lt.s32.totalorder %s242_s18, %s775_s7 }
  0x66   : > { %p772_p8 = pnand %p770_p6, %p758_p4  ;;  %p778_p11 = scmp.lt.s32.totalorder %s776_s2, %s769_s29 }
  0x68   : > { %p773_p9 = pneg %p772_p8  ;;  %p779_p10 = por %p778_p11, %p777_p13 }
  0x6a   : > { %p780_p1 = pnand %p779_p10, %p773_p9 }
  0x6c   : > { %783 = shalt.err (!%p780_p1)
}
  0x6d   : > { %580 = dma.hbm_to_vmem [thread:$0]  (!%p1151_p0), %s239_s4, 128, %s242_s18, %s227_s9  }
  0x6e   : > { %s126_s0 = ssub.s32 %s934_s27, %s1361_s13  ;;  %s129_s10 = sadd.s32 1, %s894_s17 }
  0x6f   : > { %p127_p2 = scmp.eq.s32.totalorder %s126_s0, 0  ;;  %p136_p1 = scmp.ne.s32.totalorder %s894_s17, %s890_s16 }
  0x70   : > { %p142_p10 = scmp.ne.s32.totalorder %s890_s16, %s886_s15  ;;  %p1325_p4 = scmp.eq.s32.totalorder %s938_s28, 0 }
  0x71   : > { %s1170_s21 = scalar_select %p127_p2, %s894_s17, %s129_s10  }
  0x72   : > { %p138_p7 = por %p136_p1, %p1325_p4  ;;  %p1326_p5 = scmp.ne.s32.totalorder %s1310_s30, 0 }
  0x73   : > { %s248_s8 = sand.u32 1, %s894_s17   ;;  %s550_s11 = sshll.u32 %s934_s27, 7 }
  0x74   : > { %p1176_p12 = por %p142_p10, %p1326_p5  ;;  %s549_s22 = sshll.u32 %s248_s8, 3 }
  0x75   : > { %s257_s4 = scalar_lea.hbm %s1287_s3, %s550_s11  ;;  %s252_s18 = scalar_lea.vmem [#allocation7], %s549_s22 }
  0x76   : > { %s259_s9 = sshll.u32 %s252_s18, 4  ;;  %p1328_p0 = scmp.lt.s32.totalorder %s938_s28, 4  ;;  %s260_s9 = int_to_ptr.vmem [resolvable:$true] %s259_s9 }
  0x77   : > { %s249_s7 = scalar_lea.sflag [#allocation8], %s248_s8  ;;  %s797_s2 = scalar_lea.vmem %s260_s9, 128 }
  0x78   : > { %p1187_p3 = pnand %p1328_p0, %p138_p7  ;;  %p798_p8 = scmp.ne.s32.totalorder %s260_s9, %s797_s2 }
  0x79   : > { %s943_s0 = smov [#allocation7]  }
  0x7a   : > { %p786_p6 = pneg %p1187_p3  ;;  %s802_s10 = sshll.u32 %s943_s0, 4  ;;  %s803_s10 = int_to_ptr.vmem [resolvable:$false] %s802_s10 }
  0x7b   : > { %s804_s11 = scalar_lea.vmem %s803_s10, 256  ;;  %p805_p11 = scmp.lt.s32.totalorder %s260_s9, %s803_s10 }
  0x7c   : > { %p800_p9 = pnand %p798_p8, %p786_p6  ;;  %p806_p2 = scmp.lt.s32.totalorder %s804_s11, %s797_s2 }
  0x7e   : > { %p801_p13 = pneg %p800_p9  ;;  %p807_p1 = por %p806_p2, %p805_p11 }
  0x80   : > { %p808_p10 = pnand %p807_p1, %p801_p13 }
  0x82   : > { %811 = shalt.err (!%p808_p10)
}
  0x83   : > { %583 = dma.hbm_to_vmem [thread:$0]  (!%p1187_p3), %s257_s4, 128, %s260_s9, %s249_s7  }
  0x84   : > { %p1330_p4 = scmp.ne.s32.totalorder %s1311_s5, 0 }
  0x85   : > { %s1331_s8 = sld [smem:[#allocation13_spill]] (!%p1330_p4) }
  0x86   : > { %268 = sbr.rel (%p1330_p4) target bundleno = 179 (0xb3), region = 36  ;;  %s1332_s22 = sld [smem:[#allocation17_spill]] (!%p1330_p4) }
  0x8b   : > { %s270_s29 = sand.u32 1, %s1331_s8  }
  0x8c   : > { %s1198_s12 = sshll.u32 %s270_s29, 3  ;;  %s271_s18 = scalar_lea.sflag [#allocation3], %s270_s29 }
  0x8d   : > { %s274_s0 = scalar_lea.vmem [#allocation2], %s1198_s12  ;;  %p1333_p7 = scmp.ne.s32.totalorder %s1332_s22, 0 }
  0x8f   : > { %869 = dma.done.wait (%p1333_p7), %s271_s18, 128  }
  0x90   : > { %871 = vsyncadd (%p1333_p7), %s271_s18, 4294967168  ;;  %s1334_s2 = sadd.s32 4294967295, %s938_s28   ;;  %s281_s5 = sand.u32 1, %s902_s19  }
  0x91   : > { %s279_s4 = sand.u32 1, %s1334_s2   ;;  %s553_s9 = sshll.u32 %s281_s5, 3 }
  0x92   : > { %s280_s15 = scalar_lea.sflag [#allocation5], %s279_s4  ;;  %s283_s7 = scalar_lea.vmem [#allocation4], %s553_s9 }
  0x93   : > { %p1335_p5 = scmp.ne.s32.totalorder %s1321_s6, 0 }
  0x95   : > { %873 = dma.done.wait (%p1335_p5), %s280_s15, 128  }
  0x96   : > { %875 = vsyncadd (%p1335_p5), %s280_s15, 4294967168  ;;  %p1336_p0 = scmp.ne.s32.totalorder %s1310_s30, 0 }
  0x98   : > { %877 = dma.done.wait (%p1336_p0), [#allocation5], 16  }
  0x99   : > { %879 = vsyncadd (%p1336_p0), [#allocation5], 4294967280  ;;  %s292_s10 = sand.u32 1, %s890_s16  }
  0x9a   : > { %s1217_s11 = sshll.u32 %s292_s10, 3  ;;  %s293_s8 = scalar_lea.sflag [#allocation8], %s292_s10 }
  0x9b   : > { %s296_s22 = scalar_lea.vmem [#allocation7], %s1217_s11 }
  0x9c   : > { %881 = dma.done.wait (%p1176_p12), %s293_s8, 128  }
  0x9d   : > { %883 = vsyncadd (%p1176_p12), %s293_s8, 4294967168  ;;  %s1337_s6 = sld [smem:[#allocation14_spill]]  ;;  %v360_v0 = vlaneseq  ;;  %v944_v1 = vmov 1966171168   ;;  %v701_v6 = vld [vmem:[%s283_s7 + $0x4] ss:$0 sps:$4 sm:$0xff]  }
  0x9e   : > { %s1338_s29 = sld [smem:[#allocation15_spill]]  ;;  %v358_v2 = vunpack.c.l.s4 %v944_v1  ;;  %v347_v10 = vld [vmem:[%s274_s0] sm:$0xff] }
  0x9f   : > { %v361_v3 = vshrl.u32 %v360_v0, 7  ;;  %v351_v12 = vld [vmem:[#allocation6] sm:$0x1]  ;;  %v348_v15 = vrot.slane %v347_v10, 7  ;;  %v385_v18 = vld [vmem:[%s296_s22] sm:$0xff]  ;;  %s1339_s9 = sld [smem:[#allocation20_spill]] }
  0xa0   : > { %v359_v4 = vunpack.c.0.s8 %v358_v2 }
  0xa1   : > { %v381_v13 = vsub.s32 0, %v361_v3  ;;  %vm377_vm1 = vcmp.eq.s32.totalorder %v361_v3, 0 }
  0xa2   : > { %v362_v5 = vsub.s32 %v359_v4, %v361_v3 }
  0xa3   : > { %p339_p3 = scmp.lt.s32.totalorder %s1337_s6, 1 }
  0xa4   : > { %p350_p6 = scmp.eq.s32.totalorder %s1338_s29, 0  ;;  %p341_p8 = scmp.lt.s32.totalorder %s1338_s29, 1  ;;  %v363_v7 = vrot.slane %v701_v6, %v362_v5 }
  0xa5   : > { %s1363_s6 = smov (!%p339_p3, %s1337_s6), 1 }
  0xa6   : > { %s352_s30 = scalar_select %p350_p6, 1, 0  ;;  %v364_v9 = vcombine.high %v363_v7, %v363_v7 }
  0xa7   : > { %s1365_s29 = smov (!%p341_p8, %s1338_s29), 1  ;;  %s556_s25 = sshll.u32 %s1363_s6, 1 }
  0xa8   : > { %v353_v8 = vstv %s352_s30  ;;  %v371_v11 = vrot.slane %v364_v9, %v362_v5  ;;  %s344_s18 = sadd.s32 %s556_s25, %s1365_s29 }
  0xa9   : > { %vm354_vm0 = vcmp.eq.s32.totalorder %v353_v8, 1  ;;  %s557_s2 = sshll.u32 %s344_s18, 3 }
  0xaa   : > { %v372_v14 = vcombine.high %v371_v11, %v371_v11  ;;  %s346_s15 = scalar_lea.vmem %s1339_s9, %s557_s2 }
  0xac   : > { %v374_v16 = vsel %vm354_vm0, %v351_v12, %v372_v14 }
  0xad   : > { %v382_v17 = vrot.slane %v374_v16, %v381_v13 }
  0xaf   : > { %v384_v19 = vsel %vm377_vm1, %v382_v17, %v348_v15 }
  0xb0   : > { %v386_v20 = vadd.f32 %v385_v18, %v384_v19 }
  0xb2   : > { %387 = vst [vmem:[%s346_s15] sm:$0xff] %v386_v20 }
  0xb3 PF: > { %s23_s28 = sadd.s32 1, %s938_s28   ;;  %s1341_s0 = sld [smem:[#allocation13_spill]] }
  0xb4   : > { %p1237_p12 = scmp.ge.s32.totalorder %s23_s28, 6   ;;  %s1342_s7 = sld [smem:[#allocation16_spill]] }
  0xb5   : > { %s1343_s15 = smov %s890_s16  ;;  %s1344_s16 = smov %s894_s17 }
  0xb6   : > { %s1345_s17 = smov %s1170_s21  ;;  %s1346_s18 = smov %s902_s19 }
  0xb7   : > { %s1347_s19 = smov %s906_s20  ;;  %s1348_s20 = smov %s1142_s14 }
  0xb8   : > { %s1350_s22 = smov %s918_s23  ;;  %s1351_s23 = smov %s1104_s24 }
  0xb9   : > { %s1349_s21 = smov %s1341_s0  ;;  %s1352_s24 = smov %s930_s26 }
  0xba   : > { %s1353_s25 = smov %s934_s27  ;;  %s1354_s26 = smov %s1342_s7 }
  0xbb   : > { %s1355_s27 = smov %s1361_s13  ;;  %22 = sbr.rel (!%p1237_p12) target bundleno = 16 (0x10), region = 106 }
  0xc0   :  { %415 = vsyncpa [#allocation3], 1 }
  0xc1   :  { %417 = vsyncpa [#allocation3 + $0x1], 1 }
  0xc2   :  { %418 = vsyncpa [#allocation5], 1 }
  0xc3   :  { %420 = vsyncpa [#allocation5 + $0x1], 1 }
  0xc4   :  { %421 = vsyncpa [#allocation8], 1 }
  0xc5   :  { %423 = vsyncpa [#allocation8 + $0x1], 1 }

</bundles_post_ra>
